<compile_context>
chip_gen: v7x
topology: tpu7x:2x2x1
jax: 0.10.0
libtpu: 0.0.40
codegen_flags: <defaults>
</compile_context>

<pallas_src>
import jax
import jax.numpy as jnp
from jax.experimental import pallas as pl
from jax.experimental.pallas import tpu as pltpu


def _round_up(x, m):
    return ((x + m - 1) // m) * m


def _num_tensorcores():
    """Best-effort TensorCore count of the default device (2 on v7x, else 1)."""
    try:
        n = getattr(jax.devices()[0], "num_cores", None)
        return max(1, min(2, int(n))) if n else 1
    except Exception:
        return 1


def critic_mlp_kernel(x_ref, w1_ref, w2_ref, consts_ref, out_ref):
    h1_dims = w1_ref.shape[1]
    h2_dims = w2_ref.shape[1]
    b1 = consts_ref[0:1, :h1_dims]          # (1, H1) f32
    b2 = consts_ref[1:2, :h2_dims]          # (1, H2) f32
    w3_row = consts_ref[2:3, :h2_dims]      # (1, H2) f32
    b3 = consts_ref[3:4, 0:1]               # (1, 1)  f32

    # Layer 1: tiny-K matmul kept fully in f32 (negligible FLOPs, avoids
    # quantizing the raw observation / first-layer weights).
    h1 = jnp.dot(x_ref[...], w1_ref[...],
                 preferred_element_type=jnp.float32) + b1
    h1 = jnp.maximum(h1, 0.0)

    # Layer 2: the dominant 256x256 matmul. Operands in w2's dtype (bf16 by
    # default, MXU-native on v5e/v6e/v7x); accumulation stays f32.
    h2 = jnp.dot(h1.astype(w2_ref.dtype), w2_ref[...],
                 preferred_element_type=jnp.float32) + b2
    h2 = jnp.maximum(h2, 0.0)

    # Layer 3 (Linear(H2, 1)): VPU multiply + lane reduce instead of a
    # 1-lane MXU matmul; result is a (BM,) vector of per-row values.
    v = jnp.sum(h2 * w3_row, axis=-1)                        # (BM,) f32

    # Compact lane-dense store: one (1, BM) row per grid step.
    out_ref[...] = (jnp.reshape(v, (1, -1)) + b3).astype(out_ref.dtype)


def critic_forward(state, params, *, block_batch=1024,
                   compute_dtype=jnp.bfloat16):
    """state: (B, D_in) float32 -> value: (B, 1) float32.

    compute_dtype is the operand dtype of the dominant layer-2 matmul (bf16 is
    MXU-native on all current TPUs); layer 1, accumulation, biases and the
    final reduce stay in f32.
    """
    w1, b1, w2, b2, w3, b3 = params
    B, D_in = state.shape
    H1 = w1.shape[1]
    H2 = w2.shape[1]
    Hmax = max(H1, H2)

    # Batch tiling: make tiles as large as possible (grid of 1 for typical
    # batches) and lane-friendly (multiple of 128). With 2 TensorCores (v7x)
    # split large batches into an even grid so "parallel" uses both cores.
    ncores = _num_tensorcores()
    b128 = _round_up(B, 128)
    if ncores > 1 and b128 >= ncores * 128:
        BM = min(block_batch, _round_up(pl.cdiv(B, ncores), 128))
    else:
        BM = min(block_batch, b128)
    B_pad = _round_up(B, BM)
    if B_pad != B:
        state = jnp.pad(state, ((0, B_pad - B), (0, 0)))
    grid = (B_pad // BM,)

    x = state.astype(jnp.float32)
    w1f = w1.astype(jnp.float32)
    w2c = w2.astype(compute_dtype)

    # Pack the four tiny constants into one (4, Hmax) f32 block (single DMA
    # stream): row 0 = b1, row 1 = b2, row 2 = w3, element [3, 0] = b3.
    consts = jnp.zeros((4, Hmax), jnp.float32)
    consts = consts.at[0, :H1].set(jnp.reshape(b1, (H1,)).astype(jnp.float32))
    consts = consts.at[1, :H2].set(jnp.reshape(b2, (H2,)).astype(jnp.float32))
    consts = consts.at[2, :H2].set(jnp.reshape(w3, (H2,)).astype(jnp.float32))
    consts = consts.at[3, 0].set(jnp.reshape(b3, ()).astype(jnp.float32))

    flops = 2 * B_pad * (D_in * H1 + H1 * H2 + H2)
    bytes_accessed = (B_pad * D_in * 4                       # state
                      + D_in * H1 * 4                        # w1 (f32)
                      + H1 * H2 * jnp.dtype(compute_dtype).itemsize  # w2
                      + 4 * Hmax * 4                         # packed consts
                      + B_pad * 4)                           # output row

    out = pl.pallas_call(
        critic_mlp_kernel,
        out_shape=jax.ShapeDtypeStruct((1, B_pad), jnp.float32),
        grid_spec=pltpu.PrefetchScalarGridSpec(
            num_scalar_prefetch=0,
            grid=grid,
            in_specs=[
                pl.BlockSpec((BM, D_in), lambda i: (i, 0)),   # state tile
                pl.BlockSpec((D_in, H1), lambda i: (0, 0)),   # w1 (resident)
                pl.BlockSpec((H1, H2), lambda i: (0, 0)),     # w2 (resident)
                pl.BlockSpec((4, Hmax), lambda i: (0, 0)),    # packed consts
            ],
            out_specs=pl.BlockSpec((1, BM), lambda i: (0, i)),
        ),
        compiler_params=pltpu.CompilerParams(
            dimension_semantics=("parallel",)),
        cost_estimate=pl.CostEstimate(flops=flops, transcendentals=0,
                                      bytes_accessed=bytes_accessed),
    )(x, w1f, w2c, consts)

    # (1, B_pad) row -> (B, 1) column; drop batch padding.
    return jnp.reshape(out, (B_pad, 1))[:B]


def init_critic_params(key, input_dims, fc1_dims=256, fc2_dims=256):
    """PyTorch nn.Linear-style init (uniform +/- 1/sqrt(fan_in)).
    Weights stored as (in, out): x @ W + b == PyTorch's x @ W.T + b."""
    (d_in,) = input_dims
    k1, k2, k3, k4, k5, k6 = jax.random.split(key, 6)

    def u(k, shape, fan_in):
        bound = 1.0 / jnp.sqrt(jnp.float32(fan_in))
        return jax.random.uniform(k, shape, jnp.float32, -bound, bound)

    w1 = u(k1, (d_in, fc1_dims), d_in)
    b1 = u(k2, (1, fc1_dims), d_in)
    w2 = u(k3, (fc1_dims, fc2_dims), fc1_dims)
    b2 = u(k4, (1, fc2_dims), fc1_dims)
    w3 = u(k5, (fc2_dims, 1), fc2_dims)
    b3 = u(k6, (1, 1), fc2_dims)
    return (w1, b1, w2, b2, w3, b3)


def _reference(state, params):
    w1, b1, w2, b2, w3, b3 = params
    h = jnp.maximum(state @ w1 + b1, 0.0)
    h = jnp.maximum(h @ w2 + b2, 0.0)
    return h @ w3 + b3


if __name__ == "__main__":
    key = jax.random.PRNGKey(0)
    k_param, k_state, k_big = jax.random.split(key, 3)

    # PPO-style shapes: 8-dim observation (e.g. LunarLander), batch of 8.
    batch = 8
    input_dims = (8,)
    params = init_critic_params(k_param, input_dims, fc1_dims=256, fc2_dims=256)
    state = jax.random.normal(k_state, (batch, input_dims[0]), jnp.float32)
    ref = _reference(state, params)

    # Default path: layer-2 operands in bf16 (MXU-native), everything else f32.
    value = jax.block_until_ready(critic_forward(state, params))
    assert value.shape == (batch, 1)
    assert jnp.allclose(value, ref, atol=2e-2, rtol=2e-2)

    # Full-f32 path: tight check against the plain-JAX reference.
    value_f32 = jax.block_until_ready(
        critic_forward(state, params, compute_dtype=jnp.float32))
    assert value_f32.shape == (batch, 1)
    assert jnp.allclose(value_f32, ref, atol=1e-5, rtol=1e-5)

    # Larger non-multiple-of-tile batch exercising padding and a multi-tile
    # grid (block_batch=512 -> 2 grid steps of 512 rows for B=1000).
    big_state = jax.random.normal(k_big, (1000, input_dims[0]), jnp.float32)
    big_ref = _reference(big_state, params)
    big_value = jax.block_until_ready(
        critic_forward(big_state, params, block_batch=512,
                       compute_dtype=jnp.float32))
    assert big_value.shape == (1000, 1)
    assert jnp.allclose(big_value, big_ref, atol=1e-4, rtol=1e-4)

    print("KERNEL_OK")
</pallas_src>

<mosaic_0001>
module attributes {stable_mosaic.version = 11 : i64} {
  func.func @critic_mlp_kernel(%arg0: i32, %arg1: memref<128x8xf32, #tpu.memory_space<vmem>>, %arg2: memref<8x256xf32, #tpu.memory_space<vmem>>, %arg3: memref<256x256xbf16, #tpu.memory_space<vmem>>, %arg4: memref<4x256xf32, #tpu.memory_space<vmem>>, %arg5: memref<1x128xf32, #tpu.memory_space<vmem>>) attributes {dimension_semantics = [#tpu.dimension_semantics<parallel>], iteration_bounds = array<i64: 1>, scalar_prefetch = 0 : i64, scratch_operands = 0 : i64, tpu.core_type = #tpu.core_type<tc>, window_params = [{transform_indices = @transform_0, window_bounds = array<i64: 128, 8>}, {pipeline_mode = #tpu.pipeline_mode<synchronous>, transform_indices = @transform_1, window_bounds = array<i64: 8, 256>}, {pipeline_mode = #tpu.pipeline_mode<synchronous>, transform_indices = @transform_2, window_bounds = array<i64: 256, 256>}, {pipeline_mode = #tpu.pipeline_mode<synchronous>, transform_indices = @transform_3, window_bounds = array<i64: 4, 256>}, {transform_indices = @transform_4, window_bounds = array<i64: 1, 128>}]} {
    %c0 = arith.constant 0 : index
    %c0_0 = arith.constant 0 : index
    %0 = vector.load %arg4[%c0, %c0_0] : memref<4x256xf32, #tpu.memory_space<vmem>>, vector<1x256xf32>
    %c1 = arith.constant 1 : index
    %c0_1 = arith.constant 0 : index
    %1 = vector.load %arg4[%c1, %c0_1] : memref<4x256xf32, #tpu.memory_space<vmem>>, vector<1x256xf32>
    %c2 = arith.constant 2 : index
    %c0_2 = arith.constant 0 : index
    %2 = vector.load %arg4[%c2, %c0_2] : memref<4x256xf32, #tpu.memory_space<vmem>>, vector<1x256xf32>
    %c3 = arith.constant 3 : index
    %c0_3 = arith.constant 0 : index
    %3 = vector.load %arg4[%c3, %c0_3] : memref<4x256xf32, #tpu.memory_space<vmem>>, vector<1x1xf32>
    %c0_4 = arith.constant 0 : index
    %c0_5 = arith.constant 0 : index
    %4 = vector.load %arg1[%c0_4, %c0_5] : memref<128x8xf32, #tpu.memory_space<vmem>>, vector<128x8xf32>
    %c0_6 = arith.constant 0 : index
    %c0_7 = arith.constant 0 : index
    %5 = vector.load %arg2[%c0_6, %c0_7] : memref<8x256xf32, #tpu.memory_space<vmem>>, vector<8x256xf32>
    %cst = arith.constant dense<0.000000e+00> : vector<128x256xf32>
    %6 = tpu.matmul %4, %5, %cst {dimension_numbers = #tpu.dot_dimension_numbers<[1], [0], [0], [1], [0, 0, 1, 1], [], []>} : vector<128x8xf32>, vector<8x256xf32>, vector<128x256xf32> -> vector<128x256xf32>
    %7 = vector.broadcast %0 : vector<1x256xf32> to vector<128x256xf32>
    %8 = arith.addf %6, %7 : vector<128x256xf32>
    %cst_8 = arith.constant 0.000000e+00 : f32
    %9 = vector.broadcast %cst_8 : f32 to vector<128x256xf32>
    %10 = arith.maximumf %8, %9 : vector<128x256xf32>
    %11 = arith.truncf %10 : vector<128x256xf32> to vector<128x256xbf16>
    %c0_9 = arith.constant 0 : index
    %c0_10 = arith.constant 0 : index
    %12 = vector.load %arg3[%c0_9, %c0_10] : memref<256x256xbf16, #tpu.memory_space<vmem>>, vector<256x256xbf16>
    %cst_11 = arith.constant dense<0.000000e+00> : vector<128x256xf32>
    %13 = tpu.matmul %11, %12, %cst_11 {dimension_numbers = #tpu.dot_dimension_numbers<[1], [0], [0], [1], [0, 0, 1, 1], [], []>} : vector<128x256xbf16>, vector<256x256xbf16>, vector<128x256xf32> -> vector<128x256xf32>
    %14 = vector.broadcast %1 : vector<1x256xf32> to vector<128x256xf32>
    %15 = arith.addf %13, %14 : vector<128x256xf32>
    %cst_12 = arith.constant 0.000000e+00 : f32
    %16 = vector.broadcast %cst_12 : f32 to vector<128x256xf32>
    %17 = arith.maximumf %15, %16 : vector<128x256xf32>
    %18 = vector.broadcast %2 : vector<1x256xf32> to vector<128x256xf32>
    %19 = arith.mulf %17, %18 : vector<128x256xf32>
    %cst_13 = arith.constant dense<0.000000e+00> : vector<128xf32>
    %20 = vector.multi_reduction <add>, %19, %cst_13 [1] : vector<128x256xf32> to vector<128xf32>
    %21 = vector.shape_cast %20 : vector<128xf32> to vector<1x128xf32>
    %22 = vector.broadcast %3 : vector<1x1xf32> to vector<1x128xf32>
    %23 = arith.addf %21, %22 : vector<1x128xf32>
    %c0_14 = arith.constant 0 : index
    %c0_15 = arith.constant 0 : index
    %24 = vector.load %arg5[%c0_14, %c0_15] : memref<1x128xf32, #tpu.memory_space<vmem>>, vector<1x128xf32>
    tpu.vector_store %arg5[%c0_14, %c0_15], %23 {strides = array<i32>} : memref<1x128xf32, #tpu.memory_space<vmem>>, vector<1x128xf32>,
    return
  }
  func.func @transform_0(%arg0: i32) -> (i32, i32) {
    %c0_i32 = arith.constant 0 : i32
    %c0_i32_0 = arith.constant 0 : i32
    return %arg0, %c0_i32 : i32, i32
  }
  func.func @transform_1(%arg0: i32) -> (i32, i32) {
    %c0_i32 = arith.constant 0 : i32
    %c0_i32_0 = arith.constant 0 : i32
    %c0_i32_1 = arith.constant 0 : i32
    return %c0_i32, %c0_i32_0 : i32, i32
  }
  func.func @transform_2(%arg0: i32) -> (i32, i32) {
    %c0_i32 = arith.constant 0 : i32
    %c0_i32_0 = arith.constant 0 : i32
    %c0_i32_1 = arith.constant 0 : i32
    return %c0_i32, %c0_i32_0 : i32, i32
  }
  func.func @transform_3(%arg0: i32) -> (i32, i32) {
    %c0_i32 = arith.constant 0 : i32
    %c0_i32_0 = arith.constant 0 : i32
    %c0_i32_1 = arith.constant 0 : i32
    return %c0_i32, %c0_i32_0 : i32, i32
  }
  func.func @transform_4(%arg0: i32) -> (i32, i32) {
    %c0_i32 = arith.constant 0 : i32
    %c0_i32_0 = arith.constant 0 : i32
    return %c0_i32, %arg0 : i32, i32
  }
}

</mosaic_0001>

<bundles_post_ra>
// kernel: tpu_custom_call.1
= control target key start
LH: loop header
LB: loop body
LE: loop exit
PB: predicated region body
PF: predicated region fallthrough
CT: control target
= control target key end

     0   :  { %9 = vsyncpa [#allocation3], 0  ;;  %s1491_s0 = inlined_call_operand.vmem [shape: f32[128,8], index: 0, kind: input, shape index: {}]   ;;  %s1492_s1 = inlined_call_operand.vmem [shape: f32[8,256], index: 1, kind: input, shape index: {}]   ;;  %s1493_s2 = inlined_call_operand.hbm [shape: bf16[256,256], index: 2, kind: input, shape index: {}]   ;;  %s1494_s3 = inlined_call_operand.vmem [shape: f32[4,256], index: 3, kind: input, shape index: {}]   ;;  %s1495_s4 = inlined_call_operand.hbm [shape: f32[1,128], index: 4, kind: output, shape index: {}]  }
   0x1   :  { %10 = vsyncpa [#allocation4], 0  ;;  %s1177_s15 = smov [#allocation2]   ;;  %s1129_s19 = scalar_lea.hbm %s1493_s2, 4096 }
   0x2   :  { %s20_s16 = sshll.u32 %s1177_s15, 4  ;;  %p1130_p0 = scmp.ne.s32.totalorder %s1493_s2, %s1129_s19  ;;  %s21_s16 = int_to_ptr.vmem [resolvable:$true] %s20_s16 }
   0x3   :  { %p1133_p1 = scmp.lt.u32.totalorder %s1129_s19, %s1493_s2 }
   0x5   :  { %p1135_p2 = pnand %p1133_p1, %p1130_p0 }
   0x7   :  { %1138 = shalt.err (!%p1135_p2)
}
   0x8   :  { %s1139_s24 = scalar_lea.vmem %s21_s16, 4096  ;;  %p1144_p4 = scmp.lt.s32.totalorder %s21_s16, %s21_s16 }
   0x9   :  { %p1140_p3 = scmp.ne.s32.totalorder %s21_s16, %s1139_s24  ;;  %p1145_p5 = scmp.lt.s32.totalorder %s1139_s24, %s1139_s24 }
   0xb   :  { %p1146_p6 = por %p1145_p5, %p1144_p4 }
   0xd   :  { %p1147_p7 = pnand %p1146_p6, %p1140_p3 }
   0xf   :  { %1150 = shalt.err (!%p1147_p7)
}
  0x10   :  { %s1178_s25 = smov 128   ;;  %s1179_s26 = smov 8  }
  0x11   :  { %26 = dma.hbm_to_vmem [thread:$0]  %s1493_s2, 4096, %s21_s16, [#allocation3], %s1178_s25, %s1178_s25, %s1179_s26  }
  0x12   :  { %1173 = dma.done.wait [#allocation3], 4096  }
  0x13   :  { %1174 = vsyncadd [#allocation3], 4294963200  ;;  %v1180_v0 = vmov 0.0   ;;  %v55_v1 = vld [vmem:[%s1492_s1 + $0x8] sm:$0xff]  ;;  %v54_v2 = vld [vmem:[%s1492_s1] sm:$0xff]  ;;  %vm67_vm0 = vcmask 64512   ;;  %v57_v51 = vlaneseq }
  0x14   :  { %180 = vmatprep.mubr.f32.mxu0 %v1180_v0  ;;  %v38_v3 = vld [vmem:[%s1491_s0] sm:$0xff]  ;;  %116 = vmatprep.subr.mxu0 %v55_v1  ;;  %v39_v4 = vld [vmem:[%s1491_s0 + $0x8] sm:$0xff]  ;;  %v1081_v5 = vld [vmem:[#allocation2] ss:$8 sps:$4 sm:$0xff]   ;;  %vm873_vm1 = vcmask 130112   ;;  %vm880_vm2 = vcmask 195712  }
  0x15   :  { %117 = vmatpush1.msra.mxu0 %v54_v2  ;;  %v1083_v6 = vld [vmem:[#allocation2 + $0x4] ss:$8 sps:$4 sm:$0xff]   ;;  %v1086_v8 = vld [vmem:[#allocation2 + $0x14] ss:$8 sps:$4 sm:$0xff]   ;;  %v1084_v9 = vld [vmem:[#allocation2 + $0x10] ss:$8 sps:$4 sm:$0xff]  }
  0x16   :  { %992 = vmatmul.mubr.msk.f32.vlgmr.msra.gmra.mrb[0].mxu0 %vm67_vm0, %v38_v3  ;;  %v40_v7 = vld [vmem:[%s1491_s0 + $0x10] sm:$0xff]  ;;  %528 = vmatprep.subr.bf16.mxu0 %v1083_v6  ;;  %v41_v11 = vld [vmem:[%s1491_s0 + $0x18] sm:$0xff]  ;;  %v1092_v13 = vld [vmem:[#allocation2 + $0x34] ss:$8 sps:$4 sm:$0xff]   ;;  %v1308_v52 = vshrl.u32 %v57_v51, 7  ;;  %vm887_vm3 = vcmask 261312  }
  0x17   :  { %186 = vmatprep.mubr.f32.mxu0 %v1180_v0  ;;  %1040 = vmatprep.subr.bf16.mxu1 %v1083_v6  ;;  %v1089_v10 = vld [vmem:[#allocation2 + $0x24] ss:$8 sps:$4 sm:$0xff]   ;;  %v1087_v12 = vld [vmem:[#allocation2 + $0x20] ss:$8 sps:$4 sm:$0xff]   ;;  %v42_v14 = vld [vmem:[%s1491_s0 + $0x20] sm:$0xff]  ;;  %vm894_vm4 = vcmask 326912  }
  0x18   :  { %529 = vmatpush1.bf16.msra.mxu0 %v1081_v5  ;;  %1056 = vmatpush1.bf16.msra.mxu1 %v1081_v5  ;;  %v1090_v15 = vld [vmem:[#allocation2 + $0x30] ss:$8 sps:$4 sm:$0xff]   ;;  %v1095_v16 = vld [vmem:[#allocation2 + $0x44] ss:$8 sps:$4 sm:$0xff]   ;;  %v1093_v18 = vld [vmem:[#allocation2 + $0x40] ss:$8 sps:$4 sm:$0xff]  }
  0x19   :  { %530 = vmatprep.subr.bf16.mxu0 %v1086_v8  ;;  %1041 = vmatprep.subr.bf16.mxu1 %v1086_v8  ;;  %v43_v17 = vld [vmem:[%s1491_s0 + $0x28] sm:$0xff]  ;;  %v44_v19 = vld [vmem:[%s1491_s0 + $0x30] sm:$0xff]  ;;  %v45_v23 = vld [vmem:[%s1491_s0 + $0x38] sm:$0xff]  ;;  %v1311_v53 = vsub.s32 0, %v1308_v52  ;;  %v1317_v55 = vsub.s32 1, %v1308_v52  ;;  %vm901_vm5 = vcmask 392512  }
  0x1a   :  { %993 = vmatmul.mubr.msk.f32.gmra.mrb[2].mxu0 %vm67_vm0, %v39_v4  ;;  %v1098_v20 = vld [vmem:[#allocation2 + $0x54] ss:$8 sps:$4 sm:$0xff]   ;;  %v1096_v21 = vld [vmem:[#allocation2 + $0x50] ss:$8 sps:$4 sm:$0xff]   ;;  %v1101_v22 = vld [vmem:[#allocation2 + $0x64] ss:$8 sps:$4 sm:$0xff]  }
  0x1b   :  { %192 = vmatprep.mubr.f32.mxu0 %v1180_v0  ;;  %v1099_v24 = vld [vmem:[#allocation2 + $0x60] ss:$8 sps:$4 sm:$0xff]   ;;  %v1104_v25 = vld [vmem:[#allocation2 + $0x74] ss:$8 sps:$4 sm:$0xff]   ;;  %v1102_v27 = vld [vmem:[#allocation2 + $0x70] ss:$8 sps:$4 sm:$0xff]  }
  0x1c   :  { %531 = vmatpush1.bf16.msra.mxu0 %v1084_v9  ;;  %1057 = vmatpush1.bf16.msra.mxu1 %v1084_v9  ;;  %v46_v26 = vld [vmem:[%s1491_s0 + $0x40] sm:$0xff]  ;;  %v1107_v28 = vld [vmem:[#allocation2 + $0x84] ss:$8 sps:$4 sm:$0xff]   ;;  %v47_v29 = vld [vmem:[%s1491_s0 + $0x48] sm:$0xff]  ;;  %vm908_vm6 = vcmask 458112   ;;  %vm915_vm7 = vcmask 523712  }
  0x1d   :  { %532 = vmatprep.subr.bf16.mxu0 %v1089_v10  ;;  %1042 = vmatprep.subr.bf16.mxu1 %v1089_v10  ;;  %v1105_v30 = vld [vmem:[#allocation2 + $0x80] ss:$8 sps:$4 sm:$0xff]   ;;  %v1110_v31 = vld [vmem:[#allocation2 + $0x94] ss:$8 sps:$4 sm:$0xff]   ;;  %v1108_v33 = vld [vmem:[#allocation2 + $0x90] ss:$8 sps:$4 sm:$0xff]  }
  0x1e   :  { %994 = vmatmul.mubr.msk.f32.gmra.mrb[4].mxu0 %vm67_vm0, %v40_v7  ;;  %v48_v32 = vld [vmem:[%s1491_s0 + $0x50] sm:$0xff]  ;;  %v49_v35 = vld [vmem:[%s1491_s0 + $0x58] sm:$0xff]  ;;  %v1116_v37 = vld [vmem:[#allocation2 + $0xb4] ss:$8 sps:$4 sm:$0xff]   ;;  %vm922_vm8 = vcmask 589312   ;;  %vm929_vm9 = vcmask 654912  }
  0x1f   :  { %198 = vmatprep.mubr.f32.mxu0 %v1180_v0  ;;  %v1113_v34 = vld [vmem:[#allocation2 + $0xa4] ss:$8 sps:$4 sm:$0xff]   ;;  %v1111_v36 = vld [vmem:[#allocation2 + $0xa0] ss:$8 sps:$4 sm:$0xff]   ;;  %v50_v38 = vld [vmem:[%s1491_s0 + $0x60] sm:$0xff]  ;;  %vm936_vm10 = vcmask 720512  }
  0x20   :  { %533 = vmatpush1.bf16.msra.mxu0 %v1087_v12  ;;  %1058 = vmatpush1.bf16.msra.mxu1 %v1087_v12  ;;  %v1114_v39 = vld [vmem:[#allocation2 + $0xb0] ss:$8 sps:$4 sm:$0xff]   ;;  %v1119_v40 = vld [vmem:[#allocation2 + $0xc4] ss:$8 sps:$4 sm:$0xff]   ;;  %v1117_v42 = vld [vmem:[#allocation2 + $0xc0] ss:$8 sps:$4 sm:$0xff]  }
  0x21   :  { %534 = vmatprep.subr.bf16.mxu0 %v1092_v13  ;;  %1043 = vmatprep.subr.bf16.mxu1 %v1092_v13  ;;  %v51_v41 = vld [vmem:[%s1491_s0 + $0x68] sm:$0xff]  ;;  %v52_v43 = vld [vmem:[%s1491_s0 + $0x70] sm:$0xff]  ;;  %v53_v44 = vld [vmem:[%s1491_s0 + $0x78] sm:$0xff]  ;;  %vm943_vm11 = vcmask 786112   ;;  %vm950_vm12 = vcmask 851712   ;;  %vm957_vm13 = vcmask 917312  }
  0x22   :  { %995 = vmatmul.mubr.msk.f32.gmra.mrb[6].mxu0 %vm67_vm0, %v41_v11  ;;  %v1122_v45 = vld [vmem:[#allocation2 + $0xd4] ss:$8 sps:$4 sm:$0xff]   ;;  %v1120_v46 = vld [vmem:[#allocation2 + $0xd0] ss:$8 sps:$4 sm:$0xff]   ;;  %v1125_v47 = vld [vmem:[#allocation2 + $0xe4] ss:$8 sps:$4 sm:$0xff]  }
  0x23   :  { %204 = vmatprep.mubr.f32.mxu0 %v1180_v0  ;;  %v1123_v48 = vld [vmem:[#allocation2 + $0xe0] ss:$8 sps:$4 sm:$0xff]   ;;  %v1128_v49 = vld [vmem:[#allocation2 + $0xf4] ss:$8 sps:$4 sm:$0xff]   ;;  %v1126_v50 = vld [vmem:[#allocation2 + $0xf0] ss:$8 sps:$4 sm:$0xff]  }
  0x24   :  { %535 = vmatpush1.bf16.msra.mxu0 %v1090_v15  ;;  %1059 = vmatpush1.bf16.msra.mxu1 %v1090_v15  ;;  %v32_v54 = vld [vmem:[%s1494_s3] ss:$4 sm:$0x3]  ;;  %vm964_vm14 = vcmask 982912   ;;  %vm971_vm15 = vcmask 1048512  }
  0x25   :  { %536 = vmatprep.subr.bf16.mxu0 %v1095_v16  ;;  %1044 = vmatprep.subr.bf16.mxu1 %v1095_v16  ;;  %v1320_v56 = vrot.slane %v32_v54, %v1311_v53  ;;  %v1323_v58 = vrot.slane %v32_v54, %v1317_v55 }
  0x26   :  { %996 = vmatmul.mubr.msk.f32.gmra.mrb[8].mxu0 %vm67_vm0, %v42_v14 }
  0x27   :  { %210 = vmatprep.mubr.f32.mxu0 %v1180_v0 }
  0x28   :  { %537 = vmatpush1.bf16.msra.mxu0 %v1093_v18  ;;  %1060 = vmatpush1.bf16.msra.mxu1 %v1093_v18 }
  0x29   :  { %538 = vmatprep.subr.bf16.mxu0 %v1098_v20  ;;  %1045 = vmatprep.subr.bf16.mxu1 %v1098_v20 }
  0x2a   :  { %997 = vmatmul.mubr.msk.f32.gmra.mrb[10].mxu0 %vm67_vm0, %v43_v17 }
  0x2b   :  { %216 = vmatprep.mubr.f32.mxu0 %v1180_v0 }
  0x2c   :  { %539 = vmatpush1.bf16.msra.mxu0 %v1096_v21  ;;  %1061 = vmatpush1.bf16.msra.mxu1 %v1096_v21 }
  0x2d   :  { %540 = vmatprep.subr.bf16.mxu0 %v1101_v22  ;;  %1046 = vmatprep.subr.bf16.mxu1 %v1101_v22 }
  0x2e   :  { %998 = vmatmul.mubr.msk.f32.gmra.mrb[12].mxu0 %vm67_vm0, %v44_v19 }
  0x2f   :  { %222 = vmatprep.mubr.f32.mxu0 %v1180_v0 }
  0x30   :  { %541 = vmatpush1.bf16.msra.mxu0 %v1099_v24  ;;  %1062 = vmatpush1.bf16.msra.mxu1 %v1099_v24 }
  0x31   :  { %542 = vmatprep.subr.bf16.mxu0 %v1104_v25  ;;  %1047 = vmatprep.subr.bf16.mxu1 %v1104_v25 }
  0x32   :  { %999 = vmatmul.mubr.msk.f32.gmra.mrb[14].mxu0 %vm67_vm0, %v45_v23 }
  0x33   :  { %228 = vmatprep.mubr.f32.mxu0 %v1180_v0 }
  0x34   :  { %543 = vmatpush1.bf16.msra.mxu0 %v1102_v27  ;;  %1063 = vmatpush1.bf16.msra.mxu1 %v1102_v27 }
  0x35   :  { %544 = vmatprep.subr.bf16.mxu0 %v1107_v28  ;;  %1048 = vmatprep.subr.bf16.mxu1 %v1107_v28 }
  0x36   :  { %1000 = vmatmul.mubr.msk.f32.gmra.mrb[16].mxu0 %vm67_vm0, %v46_v26 }
  0x37   :  { %234 = vmatprep.mubr.f32.mxu0 %v1180_v0 }
  0x38   :  { %545 = vmatpush1.bf16.msra.mxu0 %v1105_v30  ;;  %1064 = vmatpush1.bf16.msra.mxu1 %v1105_v30 }
  0x39   :  { %546 = vmatprep.subr.bf16.mxu0 %v1110_v31  ;;  %1049 = vmatprep.subr.bf16.mxu1 %v1110_v31 }
  0x3a   :  { %1001 = vmatmul.mubr.msk.f32.gmra.mrb[18].mxu0 %vm67_vm0, %v47_v29 }
  0x3b   :  { %240 = vmatprep.mubr.f32.mxu0 %v1180_v0 }
  0x3c   :  { %547 = vmatpush1.bf16.msra.mxu0 %v1108_v33  ;;  %1065 = vmatpush1.bf16.msra.mxu1 %v1108_v33 }
  0x3d   :  { %548 = vmatprep.subr.bf16.mxu0 %v1113_v34  ;;  %1050 = vmatprep.subr.bf16.mxu1 %v1113_v34 }
  0x3e   :  { %1002 = vmatmul.mubr.msk.f32.gmra.mrb[20].mxu0 %vm67_vm0, %v48_v32 }
  0x3f   :  { %246 = vmatprep.mubr.f32.mxu0 %v1180_v0 }
  0x40   :  { %549 = vmatpush1.bf16.msra.mxu0 %v1111_v36  ;;  %1066 = vmatpush1.bf16.msra.mxu1 %v1111_v36 }
  0x41   :  { %550 = vmatprep.subr.bf16.mxu0 %v1116_v37  ;;  %1051 = vmatprep.subr.bf16.mxu1 %v1116_v37 }
  0x42   :  { %1003 = vmatmul.mubr.msk.f32.gmra.mrb[22].mxu0 %vm67_vm0, %v49_v35 }
  0x43   :  { %252 = vmatprep.mubr.f32.mxu0 %v1180_v0 }
  0x44   :  { %551 = vmatpush1.bf16.msra.mxu0 %v1114_v39  ;;  %1067 = vmatpush1.bf16.msra.mxu1 %v1114_v39 }
  0x45   :  { %552 = vmatprep.subr.bf16.mxu0 %v1119_v40  ;;  %1052 = vmatprep.subr.bf16.mxu1 %v1119_v40 }
  0x46   :  { %1004 = vmatmul.mubr.msk.f32.gmra.mrb[24].mxu0 %vm67_vm0, %v50_v38 }
  0x47   :  { %258 = vmatprep.mubr.f32.mxu0 %v1180_v0 }
  0x48   :  { %553 = vmatpush1.bf16.msra.mxu0 %v1117_v42  ;;  %1068 = vmatpush1.bf16.msra.mxu1 %v1117_v42 }
  0x49   :  { %554 = vmatprep.subr.bf16.mxu0 %v1122_v45  ;;  %1053 = vmatprep.subr.bf16.mxu1 %v1122_v45 }
  0x4a   :  { %1005 = vmatmul.mubr.msk.f32.gmra.mrb[26].mxu0 %vm67_vm0, %v51_v41 }
  0x4b   :  { %264 = vmatprep.mubr.f32.mxu0 %v1180_v0 }
  0x4c   :  { %555 = vmatpush1.bf16.msra.mxu0 %v1120_v46  ;;  %1069 = vmatpush1.bf16.msra.mxu1 %v1120_v46 }
  0x4d   :  { %556 = vmatprep.subr.bf16.mxu0 %v1125_v47  ;;  %1054 = vmatprep.subr.bf16.mxu1 %v1125_v47 }
  0x4e   :  { %1006 = vmatmul.mubr.msk.f32.gmra.mrb[28].mxu0 %vm67_vm0, %v52_v43 }
  0x4f   :  { %270 = vmatprep.mubr.f32.mxu0 %v1180_v0 }
  0x50   :  { %557 = vmatpush1.bf16.msra.mxu0 %v1123_v48  ;;  %1070 = vmatpush1.bf16.msra.mxu1 %v1123_v48 }
  0x51   :  { %558 = vmatprep.subr.bf16.mxu0 %v1128_v49  ;;  %1055 = vmatprep.subr.bf16.mxu1 %v1128_v49 }
  0x52   :  { %1007 = vmatmul.mubr.msk.f32.gmra.mrb[30].mxu0 %vm67_vm0, %v53_v44 }
  0x54   :  { %559 = vmatpush1.bf16.msra.mxu0 %v1126_v50  ;;  %1071 = vmatpush1.bf16.msra.mxu1 %v1126_v50 }
  0xe9   :  { %v182_v57 = vpop.f32.mrb[0].mxu0 }
  0xea   :  { %v184_v59 = vpop.f32.mrb[1].mxu0  ;;  %v183_v60 = vadd.f32 %v182_v57, %v1320_v56 }
  0xeb   :  { %v185_v61 = vadd.f32 %v184_v59, %v1323_v58 }
  0xec   :  { %v277_v2 = vmax.f32 %v183_v60, 0.0 }
  0xed   :  { %v188_v62 = vpop.f32.mrb[2].mxu0  ;;  %v278_v4 = vmax.f32 %v185_v61, 0.0 }
  0xee   :  { %v189_v63 = vadd.f32 %v188_v62, %v1320_v56  ;;  %v190_v0 = vpop.f32.mrb[3].mxu0 }
  0xef   :  { %v191_v1 = vadd.f32 %v190_v0, %v1323_v58 }
  0xf0   :  { %v279_v3 = vmax.f32 %v189_v63, 0.0 }
  0xf1   :  { %v280_v5 = vmax.f32 %v191_v1, 0.0  ;;  %v194_v6 = vpop.f32.mrb[4].mxu0 }
  0xf2   :  { %v309_v7 = vpack.c.bf16 %v279_v3, %v277_v2  ;;  %v196_v8 = vpop.f32.mrb[5].mxu0  ;;  %v195_v10 = vadd.f32 %v194_v6, %v1320_v56 }
  0xf3   :  { %v310_v9 = vpack.c.bf16 %v280_v5, %v278_v4  ;;  %v197_v11 = vadd.f32 %v196_v8, %v1323_v58 }
  0xf4   :  { %v281_v16 = vmax.f32 %v195_v10, 0.0 }
  0xf5   :  { %v200_v12 = vpop.f32.mrb[6].mxu0  ;;  %560 = vmatprep.mubr.bf16.mxu0 %v310_v9  ;;  %v282_v18 = vmax.f32 %v197_v11, 0.0 }
  0xf6   :  { %v201_v13 = vadd.f32 %v200_v12, %v1320_v56  ;;  %v202_v14 = vpop.f32.mrb[7].mxu0  ;;  %561 = vmatmul.mubr.bf16.vlgmr.msra.gmra.mrb[32].mxu0 %v309_v7 }
  0xf7   :  { %v203_v15 = vadd.f32 %v202_v14, %v1323_v58 }
  0xf8   :  { %v283_v17 = vmax.f32 %v201_v13, 0.0 }
  0xf9   :  { %v284_v19 = vmax.f32 %v203_v15, 0.0  ;;  %v206_v20 = vpop.f32.mrb[8].mxu0 }
  0xfa   :  { %v311_v21 = vpack.c.bf16 %v283_v17, %v281_v16  ;;  %v207_v22 = vadd.f32 %v206_v20, %v1320_v56  ;;  %v208_v23 = vpop.f32.mrb[9].mxu0 }
  0xfb   :  { %v312_v24 = vpack.c.bf16 %v284_v19, %v282_v18  ;;  %v209_v25 = vadd.f32 %v208_v23, %v1323_v58 }
  0xfc   :  { %v285_v27 = vmax.f32 %v207_v22, 0.0 }
  0xfd   :  { %v212_v26 = vpop.f32.mrb[10].mxu0  ;;  %570 = vmatprep.mubr.bf16.mxu0 %v312_v24  ;;  %v286_v30 = vmax.f32 %v209_v25, 0.0 }
  0xfe   :  { %v213_v28 = vadd.f32 %v212_v26, %v1320_v56  ;;  %v214_v29 = vpop.f32.mrb[11].mxu0  ;;  %571 = vmatmul.mubr.bf16.gmra.mrb[36].mxu0 %v311_v21 }
  0xff   :  { %v215_v31 = vadd.f32 %v214_v29, %v1323_v58 }
 0x100   :  { %v287_v32 = vmax.f32 %v213_v28, 0.0 }
 0x101   :  { %v288_v33 = vmax.f32 %v215_v31, 0.0  ;;  %v218_v34 = vpop.f32.mrb[12].mxu0 }
 0x102   :  { %v313_v35 = vpack.c.bf16 %v287_v32, %v285_v27  ;;  %v219_v36 = vadd.f32 %v218_v34, %v1320_v56  ;;  %v220_v37 = vpop.f32.mrb[13].mxu0 }
 0x103   :  { %v314_v38 = vpack.c.bf16 %v288_v33, %v286_v30  ;;  %v221_v39 = vadd.f32 %v220_v37, %v1323_v58 }
 0x104   :  { %v289_v41 = vmax.f32 %v219_v36, 0.0 }
 0x105   :  { %v224_v40 = vpop.f32.mrb[14].mxu0  ;;  %580 = vmatprep.mubr.bf16.mxu0 %v314_v38  ;;  %v290_v44 = vmax.f32 %v221_v39, 0.0 }
 0x106   :  { %v225_v42 = vadd.f32 %v224_v40, %v1320_v56  ;;  %v226_v43 = vpop.f32.mrb[15].mxu0  ;;  %581 = vmatmul.mubr.bf16.gmra.mrb[40].mxu0 %v313_v35 }
 0x107   :  { %v227_v45 = vadd.f32 %v226_v43, %v1323_v58 }
 0x108   :  { %v291_v46 = vmax.f32 %v225_v42, 0.0 }
 0x109   :  { %v292_v47 = vmax.f32 %v227_v45, 0.0  ;;  %v230_v48 = vpop.f32.mrb[16].mxu0 }
 0x10a   :  { %v315_v49 = vpack.c.bf16 %v291_v46, %v289_v41  ;;  %v231_v50 = vadd.f32 %v230_v48, %v1320_v56  ;;  %v232_v54 = vpop.f32.mrb[17].mxu0  ;;  %v1181_v48 = vmov 0  }
 0x10b   :  { %v233_v57 = vadd.f32 %v232_v54, %v1323_v58  ;;  %v316_v59 = vpack.c.bf16 %v292_v47, %v290_v44  ;;  %1079 = vset.pattern.permute.xlu1 %v1181_v48  ;;  %1080 = vset.pattern.permute.xlu0 %v1181_v48 }
 0x10c   :  { %v293_v61 = vmax.f32 %v231_v50, 0.0 }
 0x10d   :  { %v236_v60 = vpop.f32.mrb[18].mxu0  ;;  %590 = vmatprep.mubr.bf16.mxu1 %v316_v59  ;;  %v294_v0 = vmax.f32 %v233_v57, 0.0 }
 0x10e   :  { %v237_v62 = vadd.f32 %v236_v60, %v1320_v56  ;;  %v238_v63 = vpop.f32.mrb[19].mxu0  ;;  %591 = vmatmul.mubr.bf16.vlgmr.msra.gmra.mrb[0].mxu1 %v315_v49  ;;  %v990_v49 = vld [vmem:[%s1494_s3 + $0x1] ss:$4 sm:$0x3] }
 0x10f   :  { %v239_v1 = vadd.f32 %v238_v63, %v1323_v58  ;;  %v1364_v50 = vrot.slane %v990_v49, %v1317_v55 }
 0x110   :  { %v295_v2 = vmax.f32 %v237_v62, 0.0 }
 0x111   :  { %v296_v3 = vmax.f32 %v239_v1, 0.0  ;;  %v242_v4 = vpop.f32.mrb[20].mxu0 }
 0x112   :  { %v317_v5 = vpack.c.bf16 %v295_v2, %v293_v61  ;;  %v243_v6 = vadd.f32 %v242_v4, %v1320_v56  ;;  %v244_v7 = vpop.f32.mrb[21].mxu0 }
 0x113   :  { %v318_v8 = vpack.c.bf16 %v296_v3, %v294_v0  ;;  %v245_v9 = vadd.f32 %v244_v7, %v1323_v58 }
 0x114   :  { %v297_v11 = vmax.f32 %v243_v6, 0.0 }
 0x115   :  { %v248_v10 = vpop.f32.mrb[22].mxu0  ;;  %600 = vmatprep.mubr.bf16.mxu1 %v318_v8  ;;  %v298_v14 = vmax.f32 %v245_v9, 0.0 }
 0x116   :  { %v249_v12 = vadd.f32 %v248_v10, %v1320_v56  ;;  %v250_v13 = vpop.f32.mrb[23].mxu0  ;;  %601 = vmatmul.mubr.bf16.gmra.mrb[4].mxu1 %v317_v5 }
 0x117   :  { %v251_v15 = vadd.f32 %v250_v13, %v1323_v58 }
 0x118   :  { %v299_v16 = vmax.f32 %v249_v12, 0.0 }
 0x119   :  { %v300_v17 = vmax.f32 %v251_v15, 0.0  ;;  %v254_v18 = vpop.f32.mrb[24].mxu0 }
 0x11a   :  { %v319_v19 = vpack.c.bf16 %v299_v16, %v297_v11  ;;  %v255_v20 = vadd.f32 %v254_v18, %v1320_v56  ;;  %v256_v21 = vpop.f32.mrb[25].mxu0 }
 0x11b   :  { %v320_v22 = vpack.c.bf16 %v300_v17, %v298_v14  ;;  %v257_v23 = vadd.f32 %v256_v21, %v1323_v58 }
 0x11c   :  { %v301_v25 = vmax.f32 %v255_v20, 0.0 }
 0x11d   :  { %v260_v24 = vpop.f32.mrb[26].mxu0  ;;  %610 = vmatprep.mubr.bf16.mxu1 %v320_v22  ;;  %v302_v28 = vmax.f32 %v257_v23, 0.0 }
 0x11e   :  { %v261_v26 = vadd.f32 %v260_v24, %v1320_v56  ;;  %v262_v27 = vpop.f32.mrb[27].mxu0  ;;  %611 = vmatmul.mubr.bf16.gmra.mrb[8].mxu1 %v319_v19 }
 0x11f   :  { %v263_v29 = vadd.f32 %v262_v27, %v1323_v58 }
 0x120   :  { %v303_v30 = vmax.f32 %v261_v26, 0.0 }
 0x121   :  { %v304_v31 = vmax.f32 %v263_v29, 0.0  ;;  %v266_v32 = vpop.f32.mrb[28].mxu0 }
 0x122   :  { %v321_v33 = vpack.c.bf16 %v303_v30, %v301_v25  ;;  %v267_v34 = vadd.f32 %v266_v32, %v1320_v56  ;;  %v268_v35 = vpop.f32.mrb[29].mxu0 }
 0x123   :  { %v322_v36 = vpack.c.bf16 %v304_v31, %v302_v28  ;;  %v269_v37 = vadd.f32 %v268_v35, %v1323_v58 }
 0x124   :  { %v305_v39 = vmax.f32 %v267_v34, 0.0 }
 0x125   :  { %v272_v38 = vpop.f32.mrb[30].mxu0  ;;  %620 = vmatprep.mubr.bf16.mxu1 %v322_v36  ;;  %v306_v42 = vmax.f32 %v269_v37, 0.0 }
 0x126   :  { %v273_v40 = vadd.f32 %v272_v38, %v1320_v56  ;;  %v274_v41 = vpop.f32.mrb[31].mxu0  ;;  %621 = vmatmul.mubr.bf16.gmra.mrb[12].mxu1 %v321_v33  ;;  %v1361_v56 = vrot.slane %v990_v49, %v1311_v53 }
 0x127   :  { %v275_v43 = vadd.f32 %v274_v41, %v1323_v58  ;;  %v991_v58 = vld [vmem:[%s1494_s3 + $0x2] ss:$4 sm:$0x3] }
 0x128   :  { %v307_v44 = vmax.f32 %v273_v40, 0.0  ;;  %v1371_v60 = vrot.slane %v991_v58, %v1311_v53  ;;  %v1375_v63 = vrot.slane %v991_v58, %v1317_v55 }
 0x129   :  { %v308_v45 = vmax.f32 %v275_v43, 0.0 }
 0x12a   :  { %v323_v46 = vpack.c.bf16 %v307_v44, %v305_v39 }
 0x12b   :  { %v324_v47 = vpack.c.bf16 %v308_v45, %v306_v42 }
 0x12d   :  { %630 = vmatprep.mubr.bf16.mxu1 %v324_v47 }
 0x12e   :  { %631 = vmatmul.mubr.bf16.gmra.mrb[16].mxu1 %v323_v46 }
 0x1c9   :  { %v562_v54 = vpop.f32.mrb[32].mxu0 }
 0x1ca   :  { %v563_v57 = vadd.f32 %v562_v54, %v1361_v56  ;;  %v564_v59 = vpop.f32.mrb[33].mxu0 }
 0x1cb   :  { %v565_v61 = vadd.f32 %v564_v59, %v1364_v50  ;;  %v566_v62 = vpop.f32.mrb[34].mxu0 }
 0x1cc   :  { %v641_v0 = vmax.f32 %v563_v57, 0.0  ;;  %v567_v1 = vadd.f32 %v566_v62, %v1361_v56  ;;  %v568_v2 = vpop.f32.mrb[35].mxu0 }
 0x1cd   :  { %v642_v3 = vmax.f32 %v565_v61, 0.0  ;;  %v569_v4 = vadd.f32 %v568_v2, %v1364_v50 }
 0x1ce   :  { %v643_v5 = vmax.f32 %v567_v1, 0.0  ;;  %v684_v6 = vmul.f32 %v1371_v60, %v641_v0 }
 0x1cf   :  { %v644_v7 = vmax.f32 %v569_v4, 0.0  ;;  %v685_v8 = vmul.f32 %v1375_v63, %v642_v3 }
 0x1d0   :  { %v686_v9 = vmul.f32 %v1371_v60, %v643_v5 }
 0x1d1   :  { %v687_v10 = vmul.f32 %v1375_v63, %v644_v7  ;;  %v572_v11 = vpop.f32.mrb[36].mxu0  ;;  %v716_v55 = vadd.f32 %v685_v8, %v684_v6 }
 0x1d2   :  { %v573_v12 = vadd.f32 %v572_v11, %v1361_v56  ;;  %v574_v13 = vpop.f32.mrb[37].mxu0 }
 0x1d3   :  { %v575_v14 = vadd.f32 %v574_v13, %v1364_v50  ;;  %v576_v15 = vpop.f32.mrb[38].mxu0  ;;  %717 = vadd.xlane.f32.xlu0 %v716_v55  ;;  %v719_v16 = vadd.f32 %v687_v10, %v686_v9 }
 0x1d4   :  { %v645_v17 = vmax.f32 %v573_v12, 0.0  ;;  %v577_v18 = vadd.f32 %v576_v15, %v1361_v56  ;;  %v578_v19 = vpop.f32.mrb[39].mxu0 }
 0x1d5   :  { %v646_v20 = vmax.f32 %v575_v14, 0.0  ;;  %v579_v21 = vadd.f32 %v578_v19, %v1364_v50  ;;  %v37_v19 = vld [vmem:[%s1494_s3 + $0x3] sm:$0x1]  ;;  %s1183_s3 = smov [#allocation5]  }
 0x1d6   :  { %v647_v22 = vmax.f32 %v577_v18, 0.0  ;;  %v688_v23 = vmul.f32 %v1371_v60, %v645_v17  ;;  %s981_s16 = sshll.u32 %s1183_s3, 4  ;;  %s982_s16 = int_to_ptr.vmem [resolvable:$true] %s981_s16 }
 0x1d7   :  { %v648_v24 = vmax.f32 %v579_v21, 0.0  ;;  %720 = vadd.xlane.f32.xlu0 %v719_v16  ;;  %v689_v25 = vmul.f32 %v1375_v63, %v646_v20  ;;  %s1151_s17 = scalar_lea.vmem %s982_s16, 16  ;;  %s1155_s18 = scalar_lea.vmem %s982_s16, 32 }
 0x1d8   :  { %v690_v26 = vmul.f32 %v1371_v60, %v647_v22  ;;  %p1152_p8 = scmp.ne.s32.totalorder %s982_s16, %s1151_s17  ;;  %p1156_p9 = scmp.lt.s32.totalorder %s982_s16, %s982_s16 }
 0x1d9   :  { %v691_v27 = vmul.f32 %v1375_v63, %v648_v24  ;;  %v582_v28 = vpop.f32.mrb[40].mxu0  ;;  %v722_v29 = vadd.f32 %v689_v25, %v688_v23  ;;  %p1157_p10 = scmp.lt.s32.totalorder %s1155_s18, %s1151_s17 }
 0x1da   :  { %v583_v30 = vadd.f32 %v582_v28, %v1361_v56  ;;  %v584_v31 = vpop.f32.mrb[41].mxu0 }
 0x1db   :  { %v585_v32 = vadd.f32 %v584_v31, %v1364_v50  ;;  %723 = vadd.xlane.f32.xlu1 %v722_v29  ;;  %v586_v33 = vpop.f32.mrb[42].mxu0  ;;  %v725_v34 = vadd.f32 %v691_v27, %v690_v26  ;;  %p1158_p11 = por %p1157_p10, %p1156_p9 }
 0x1dc   :  { %v649_v35 = vmax.f32 %v583_v30, 0.0  ;;  %v587_v36 = vadd.f32 %v586_v33, %v1361_v56  ;;  %v588_v37 = vpop.f32.mrb[43].mxu0 }
 0x1dd   :  { %v650_v38 = vmax.f32 %v585_v32, 0.0  ;;  %v589_v39 = vadd.f32 %v588_v37, %v1364_v50  ;;  %p1159_p12 = pnand %p1158_p11, %p1152_p8 }
 0x1de   :  { %v692_v40 = vmul.f32 %v1371_v60, %v649_v35  ;;  %v651_v41 = vmax.f32 %v587_v36, 0.0 }
 0x1df   :  { %v693_v42 = vmul.f32 %v1375_v63, %v650_v38  ;;  %v652_v43 = vmax.f32 %v589_v39, 0.0  ;;  %726 = vadd.xlane.f32.xlu1 %v725_v34 }
 0x1e0   :  { %v694_v44 = vmul.f32 %v1371_v60, %v651_v41 }
 0x1e1   :  { %v695_v45 = vmul.f32 %v1375_v63, %v652_v43  ;;  %v592_v46 = vpop.f32.mrb[0].mxu1  ;;  %v728_v47 = vadd.f32 %v693_v42, %v692_v40 }
 0x1e2   :  { %v593_v48 = vadd.f32 %v592_v46, %v1361_v56  ;;  %v594_v49 = vpop.f32.mrb[1].mxu1 }
 0x1e3   :  { %v595_v58 = vadd.f32 %v594_v49, %v1364_v50  ;;  %729 = vadd.xlane.f32.xlu0 %v728_v47  ;;  %v596_v54 = vpop.f32.mrb[2].mxu1  ;;  %v731_v57 = vadd.f32 %v695_v45, %v694_v44 }
 0x1e4   :  { %v653_v59 = vmax.f32 %v593_v48, 0.0  ;;  %v597_v61 = vadd.f32 %v596_v54, %v1361_v56  ;;  %v598_v62 = vpop.f32.mrb[3].mxu1 }
 0x1e5   :  { %v654_v0 = vmax.f32 %v595_v58, 0.0  ;;  %v599_v1 = vadd.f32 %v598_v62, %v1364_v50 }
 0x1e6   :  { %v696_v2 = vmul.f32 %v1371_v60, %v653_v59  ;;  %v655_v3 = vmax.f32 %v597_v61, 0.0 }
 0x1e7   :  { %v697_v4 = vmul.f32 %v1375_v63, %v654_v0  ;;  %v656_v5 = vmax.f32 %v599_v1, 0.0  ;;  %732 = vadd.xlane.f32.xlu0 %v731_v57 }
 0x1e8   :  { %v698_v6 = vmul.f32 %v1371_v60, %v655_v3 }
 0x1e9   :  { %v699_v7 = vmul.f32 %v1375_v63, %v656_v5  ;;  %v602_v8 = vpop.f32.mrb[4].mxu1  ;;  %v734_v9 = vadd.f32 %v697_v4, %v696_v2 }
 0x1ea   :  { %v603_v10 = vadd.f32 %v602_v8, %v1361_v56  ;;  %v604_v11 = vpop.f32.mrb[5].mxu1 }
 0x1eb   :  { %v605_v55 = vadd.f32 %v604_v11, %v1364_v50  ;;  %735 = vadd.xlane.f32.xlu0 %v734_v9  ;;  %v606_v12 = vpop.f32.mrb[6].mxu1  ;;  %v737_v13 = vadd.f32 %v699_v7, %v698_v6 }
 0x1ec   :  { %v657_v14 = vmax.f32 %v603_v10, 0.0  ;;  %v607_v15 = vadd.f32 %v606_v12, %v1361_v56  ;;  %v608_v16 = vpop.f32.mrb[7].mxu1 }
 0x1ed   :  { %v658_v17 = vmax.f32 %v605_v55, 0.0  ;;  %v609_v18 = vadd.f32 %v608_v16, %v1364_v50 }
 0x1ee   :  { %v700_v20 = vmul.f32 %v1371_v60, %v657_v14  ;;  %v659_v21 = vmax.f32 %v607_v15, 0.0 }
 0x1ef   :  { %v701_v22 = vmul.f32 %v1375_v63, %v658_v17  ;;  %738 = vadd.xlane.f32.xlu0 %v737_v13  ;;  %v660_v23 = vmax.f32 %v609_v18, 0.0 }
 0x1f0   :  { %v702_v24 = vmul.f32 %v1371_v60, %v659_v21  ;;  %766 = vperm.xlu1 %1079, %v37_v19  }
 0x1f1   :  { %v703_v25 = vmul.f32 %v1375_v63, %v660_v23  ;;  %v612_v26 = vpop.f32.mrb[8].mxu1  ;;  %v740_v27 = vadd.f32 %v701_v22, %v700_v20 }
 0x1f2   :  { %v613_v28 = vadd.f32 %v612_v26, %v1361_v56  ;;  %v614_v29 = vpop.f32.mrb[9].mxu1 }
 0x1f3   :  { %v615_v30 = vadd.f32 %v614_v29, %v1364_v50  ;;  %741 = vadd.xlane.f32.xlu0 %v740_v27  ;;  %v616_v31 = vpop.f32.mrb[10].mxu1  ;;  %v743_v32 = vadd.f32 %v703_v25, %v702_v24 }
 0x1f4   :  { %v661_v33 = vmax.f32 %v613_v28, 0.0  ;;  %v617_v34 = vadd.f32 %v616_v31, %v1361_v56  ;;  %v618_v35 = vpop.f32.mrb[11].mxu1 }
 0x1f5   :  { %v662_v36 = vmax.f32 %v615_v30, 0.0  ;;  %v619_v37 = vadd.f32 %v618_v35, %v1364_v50 }
 0x1f6   :  { %v704_v38 = vmul.f32 %v1371_v60, %v661_v33  ;;  %v663_v39 = vmax.f32 %v617_v34, 0.0 }
 0x1f7   :  { %v705_v40 = vmul.f32 %v1375_v63, %v662_v36  ;;  %v664_v41 = vmax.f32 %v619_v37, 0.0 }
 0x1f8   :  { %v706_v42 = vmul.f32 %v1371_v60, %v663_v39 }
 0x1f9   :  { %v707_v43 = vmul.f32 %v1375_v63, %v664_v41  ;;  %v622_v44 = vpop.f32.mrb[12].mxu1  ;;  %v746_v45 = vadd.f32 %v705_v40, %v704_v38 }
 0x1fa   :  { %v623_v46 = vadd.f32 %v622_v44, %v1361_v56  ;;  %v624_v47 = vpop.f32.mrb[13].mxu1 }
 0x1fb   :  { %v625_v48 = vadd.f32 %v624_v47, %v1364_v50  ;;  %747 = vadd.xlane.f32.xlu0 %v746_v45  ;;  %v626_v49 = vpop.f32.mrb[14].mxu1  ;;  %v749_v58 = vadd.f32 %v707_v43, %v706_v42 }
 0x1fc   :  { %v665_v54 = vmax.f32 %v623_v46, 0.0  ;;  %v627_v57 = vadd.f32 %v626_v49, %v1361_v56  ;;  %v628_v59 = vpop.f32.mrb[15].mxu1 }
 0x1fd   :  { %v666_v61 = vmax.f32 %v625_v48, 0.0  ;;  %v629_v62 = vadd.f32 %v628_v59, %v1364_v50 }
 0x1fe   :  { %v708_v0 = vmul.f32 %v1371_v60, %v665_v54  ;;  %v667_v1 = vmax.f32 %v627_v57, 0.0 }
 0x1ff   :  { %v709_v2 = vmul.f32 %v1375_v63, %v666_v61  ;;  %v668_v3 = vmax.f32 %v629_v62, 0.0  ;;  %750 = vadd.xlane.f32.xlu0 %v749_v58 }
 0x200   :  { %v710_v4 = vmul.f32 %v1371_v60, %v667_v1 }
 0x201   :  { %v711_v5 = vmul.f32 %v1375_v63, %v668_v3  ;;  %v632_v6 = vpop.f32.mrb[16].mxu1  ;;  %v752_v7 = vadd.f32 %v709_v2, %v708_v0 }
 0x202   :  { %v633_v8 = vadd.f32 %v632_v6, %v1361_v56  ;;  %v634_v9 = vpop.f32.mrb[17].mxu1 }
 0x203   :  { %v635_v10 = vadd.f32 %v634_v9, %v1364_v50  ;;  %753 = vadd.xlane.f32.xlu0 %v752_v7  ;;  %v636_v11 = vpop.f32.mrb[18].mxu1  ;;  %v755_v55 = vadd.f32 %v711_v5, %v710_v4  ;;  %v1445_v7 = vand.u32 127, %v57_v51 }
 0x204   :  { %v669_v12 = vmax.f32 %v633_v8, 0.0  ;;  %v637_v13 = vadd.f32 %v636_v11, %v1361_v56  ;;  %v638_v14 = vpop.f32.mrb[19].mxu1  ;;  %v1182_v56 = vmov 839922192  }
 0x205   :  { %v670_v15 = vmax.f32 %v635_v10, 0.0  ;;  %v639_v16 = vadd.f32 %v638_v14, %v1364_v50  ;;  %v770_v25 = vunpack.c.l.s4 %v1182_v56  ;;  %v868_v9 = vadd.s32 4294967288, %v1445_v7 }
 0x206   :  { %v712_v17 = vmul.f32 %v1371_v60, %v669_v12  ;;  %v671_v18 = vmax.f32 %v637_v13, 0.0  ;;  %v875_v10 = vadd.s32 4294967280, %v1445_v7  ;;  %v882_v11 = vadd.s32 4294967272, %v1445_v7 }
 0x207   :  { %v713_v19 = vmul.f32 %v1375_v63, %v670_v15  ;;  %v672_v20 = vmax.f32 %v639_v16, 0.0  ;;  %756 = vadd.xlane.f32.xlu0 %v755_v55  ;;  %v771_v27 = vunpack.c.0.s8 %v770_v25  ;;  %v889_v55 = vadd.s32 4294967264, %v1445_v7 }
 0x208   :  { %v714_v21 = vmul.f32 %v1371_v60, %v671_v18  ;;  %v871_v12 = vsub.s32 %v868_v9, %v1308_v52  ;;  %v866_v13 = vsub.s32 %v1445_v7, %v1308_v52  ;;  %v896_v14 = vadd.s32 4294967256, %v1445_v7 }
 0x209   :  { %v715_v22 = vmul.f32 %v1375_v63, %v672_v20  ;;  %v758_v23 = vadd.f32 %v713_v19, %v712_v17  ;;  %v774_v30 = vsub.s32 %v771_v27, %v1308_v52  ;;  %v878_v51 = vsub.s32 %v875_v10, %v1308_v52 }
 0x20a   :  { %v903_v17 = vadd.s32 4294967248, %v1445_v7  ;;  %v885_v18 = vsub.s32 %v882_v11, %v1308_v52  ;;  %v892_v19 = vsub.s32 %v889_v55, %v1308_v52  ;;  %v917_v56 = vadd.s32 4294967232, %v1445_v7 }
 0x20b   :  { %759 = vadd.xlane.f32.xlu0 %v758_v23  ;;  %v761_v24 = vadd.f32 %v715_v22, %v714_v21  ;;  %v899_v22 = vsub.s32 %v896_v14, %v1308_v52 }
 0x20f   :  { %762 = vadd.xlane.f32.xlu0 %v761_v24  ;;  %v906_v24 = vsub.s32 %v903_v17, %v1308_v52 }
 0x214   :  { %744 = vadd.xlane.f32.xlu1 %v743_v32 }
 0x260   :  { %v718_v26 = vpop.xlane.xlu0 %717 }
 0x264   :  { %v721_v28 = vpop.xlane.xlu0 %720 }
 0x268   :  { %v724_v50 = vpop.xlane.xlu1 %723 }
 0x26c   :  { %v727_v29 = vpop.xlane.xlu1 %726 }
 0x270   :  { %v767_v31 = vpop.permute.xlu1 %766  ;;  %v730_v33 = vpop.xlane.xlu0 %729 }
 0x271   :  { %v775_v34 = vrot.slane %v767_v31, %v774_v30  ;;  %v924_v30 = vadd.s32 4294967224, %v1445_v7 }
 0x273   :  { %v780_v60 = vrot.slane %v775_v34, %v1311_v53  ;;  %v920_v34 = vsub.s32 %v917_v56, %v1308_v52 }
 0x274   :  { %v733_v63 = vpop.xlane.xlu0 %732 }
 0x275   :  { %v782_v35 = vadd.f32 %v780_v60, %v718_v26  ;;  %v783_v36 = vadd.f32 %v780_v60, %v721_v28  ;;  %v784_v37 = vadd.f32 %v780_v60, %v724_v50  ;;  %v785_v40 = vadd.f32 %v780_v60, %v727_v29 }
 0x276   :  { %v786_v41 = vadd.f32 %v780_v60, %v730_v33  ;;  %v787_v43 = vadd.f32 %v780_v60, %v733_v63  ;;  %v910_v26 = vadd.s32 4294967240, %v1445_v7 }
 0x277   :  { %815 = vperm.xlu0 %1080, %v782_v35   ;;  %818 = vperm.xlu1 %1079, %v783_v36  }
 0x278   :  { %v736_v32 = vpop.xlane.xlu0 %735  ;;  %v913_v63 = vsub.s32 %v910_v26, %v1308_v52 }
 0x279   :  { %v788_v53 = vadd.f32 %v780_v60, %v736_v32  ;;  %v931_v32 = vadd.s32 4294967216, %v1445_v7 }
 0x27b   :  { %821 = vperm.xlu1 %1079, %v784_v37  }
 0x27c   :  { %v739_v38 = vpop.xlane.xlu0 %738 }
 0x27d   :  { %v789_v39 = vadd.f32 %v780_v60, %v739_v38 }
 0x27f   :  { %824 = vperm.xlu1 %1079, %v785_v40   ;;  %836 = vperm.xlu0 %1080, %v789_v39   ;;  %v927_v39 = vsub.s32 %v924_v30, %v1308_v52  ;;  %v938_v40 = vadd.s32 4294967208, %v1445_v7 }
 0x280   :  { %v742_v42 = vpop.xlane.xlu0 %741 }
 0x281   :  { %v790_v46 = vadd.f32 %v780_v60, %v742_v42 }
 0x283   :  { %827 = vperm.xlu1 %1079, %v786_v41  }
 0x287   :  { %830 = vperm.xlu1 %1079, %v787_v43  }
 0x288   :  { %v748_v44 = vpop.xlane.xlu0 %747 }
 0x289   :  { %v792_v48 = vadd.f32 %v780_v60, %v748_v44  ;;  %v934_v44 = vsub.s32 %v931_v32, %v1308_v52 }
 0x28b   :  { %833 = vperm.xlu1 %1079, %v788_v53   ;;  %v945_v53 = vadd.s32 4294967200, %v1445_v7 }
 0x28c   :  { %v751_v45 = vpop.xlane.xlu0 %750 }
 0x28d   :  { %v793_v62 = vadd.f32 %v780_v60, %v751_v45 }
 0x28f   :  { %839 = vperm.xlu1 %1079, %v790_v46  }
 0x290   :  { %v754_v47 = vpop.xlane.xlu0 %753 }
 0x291   :  { %v794_v58 = vadd.f32 %v780_v60, %v754_v47 }
 0x293   :  { %845 = vperm.xlu1 %1079, %v792_v48   ;;  %v941_v48 = vsub.s32 %v938_v40, %v1308_v52 }
 0x294   :  { %v757_v49 = vpop.xlane.xlu0 %756 }
 0x295   :  { %v795_v0 = vadd.f32 %v780_v60, %v757_v49  ;;  %v952_v49 = vadd.s32 4294967192, %v1445_v7 }
 0x297   :  { %851 = vperm.xlu1 %1079, %v794_v58  }
 0x298   :  { %v760_v54 = vpop.xlane.xlu0 %759 }
 0x299   :  { %v796_v57 = vadd.f32 %v780_v60, %v760_v54 }
 0x29b   :  { %857 = vperm.xlu1 %1079, %v796_v57  }
 0x29c   :  { %v763_v1 = vpop.xlane.xlu0 %762 }
 0x29d   :  { %v797_v2 = vadd.f32 %v780_v60, %v763_v1 }
 0x2a1   :  { %v745_v59 = vpop.xlane.xlu1 %744 }
 0x2a2   :  { %v791_v61 = vadd.f32 %v780_v60, %v745_v59 }
 0x2a4   :  { %842 = vperm.xlu0 %1080, %v791_v61   ;;  %v948_v61 = vsub.s32 %v945_v53, %v1308_v52 }
 0x2a8   :  { %848 = vperm.xlu0 %1080, %v793_v62   ;;  %v959_v62 = vadd.s32 4294967184, %v1445_v7 }
 0x2ac   :  { %854 = vperm.xlu0 %1080, %v795_v0  }
 0x2b0   :  { %860 = vperm.xlu0 %1080, %v797_v2   ;;  %v955_v2 = vsub.s32 %v952_v49, %v1308_v52 }
 0x2f6   :  { %v819_v3 = vpop.permute.xlu1 %818  ;;  %v816_v16 = vpop.permute.xlu0 %815 }
 0x2f7   :  { %v872_v20 = vrot.slane %v819_v3, %v871_v12  ;;  %v867_v21 = vrot.slane %v816_v16, %v866_v13  ;;  %v966_v3 = vadd.s32 4294967176, %v1445_v7 }
 0x2f9   :  { %v874_v28 = vsel %vm873_vm1, %v872_v20, %v867_v21  ;;  %v969_v55 = vsub.s32 %v966_v3, %v1308_v52 }
 0x2fa   :  { %v822_v4 = vpop.permute.xlu1 %821 }
 0x2fb   :  { %v879_v23 = vrot.slane %v822_v4, %v878_v51 }
 0x2fd   :  { %v881_v31 = vsel %vm880_vm2, %v879_v23, %v874_v28 }
 0x2fe   :  { %v825_v5 = vpop.permute.xlu1 %824  ;;  %v837_v35 = vpop.permute.xlu0 %836 }
 0x2ff   :  { %v886_v25 = vrot.slane %v825_v5, %v885_v18  ;;  %v914_v43 = vrot.slane %v837_v35, %v913_v63 }
 0x301   :  { %v888_v60 = vsel %vm887_vm3, %v886_v25, %v881_v31 }
 0x302   :  { %v828_v6 = vpop.permute.xlu1 %827 }
 0x303   :  { %v893_v27 = vrot.slane %v828_v6, %v892_v19 }
 0x305   :  { %v895_v36 = vsel %vm894_vm4, %v893_v27, %v888_v60 }
 0x306   :  { %v831_v8 = vpop.permute.xlu1 %830 }
 0x307   :  { %v900_v29 = vrot.slane %v831_v8, %v899_v22  ;;  %v962_v8 = vsub.s32 %v959_v62, %v1308_v52 }
 0x309   :  { %v902_v37 = vsel %vm901_vm5, %v900_v29, %v895_v36 }
 0x30a   :  { %v834_v15 = vpop.permute.xlu1 %833 }
 0x30b   :  { %v907_v33 = vrot.slane %v834_v15, %v906_v24 }
 0x30d   :  { %v909_v41 = vsel %vm908_vm6, %v907_v33, %v902_v37 }
 0x30e   :  { %v840_v50 = vpop.permute.xlu1 %839  ;;  %v916_v46 = vsel %vm915_vm7, %v914_v43, %v909_v41 }
 0x30f   :  { %v921_v42 = vrot.slane %v840_v50, %v920_v34 }
 0x311   :  { %v923_v58 = vsel %vm922_vm8, %v921_v42, %v916_v46 }
 0x312   :  { %v846_v38 = vpop.permute.xlu1 %845 }
 0x313   :  { %v935_v59 = vrot.slane %v846_v38, %v934_v44 }
 0x316   :  { %v852_v54 = vpop.permute.xlu1 %851 }
 0x317   :  { %v949_v6 = vrot.slane %v852_v54, %v948_v61 }
 0x31a   :  { %v858_v10 = vpop.permute.xlu1 %857 }
 0x31b   :  { %v963_v14 = vrot.slane %v858_v10, %v962_v8 }
 0x323   :  { %v843_v45 = vpop.permute.xlu0 %842 }
 0x324   :  { %v928_v47 = vrot.slane %v843_v45, %v927_v39 }
 0x326   :  { %v930_v57 = vsel %vm929_vm9, %v928_v47, %v923_v58 }
 0x327   :  { %v849_v0 = vpop.permute.xlu0 %848  ;;  %v937_v4 = vsel %vm936_vm10, %v935_v59, %v930_v57 }
 0x328   :  { %v942_v1 = vrot.slane %v849_v0, %v941_v48 }
 0x32a   :  { %v944_v5 = vsel %vm943_vm11, %v942_v1, %v937_v4 }
 0x32b   :  { %v855_v9 = vpop.permute.xlu0 %854  ;;  %v951_v12 = vsel %vm950_vm12, %v949_v6, %v944_v5 }
 0x32c   :  { %v956_v11 = vrot.slane %v855_v9, %v955_v2 }
 0x32e   :  { %v958_v13 = vsel %vm957_vm13, %v956_v11, %v951_v12 }
 0x32f   :  { %v861_v15 = vpop.permute.xlu0 %860  ;;  %v965_v16 = vsel %vm964_vm14, %v963_v14, %v958_v13 }
 0x330   :  { %v970_v7 = vrot.slane %v861_v15, %v969_v55 }
 0x332   :  { %v972_v51 = vsel %vm971_vm15, %v970_v7, %v965_v16 }
 0x333   :  { %974 = vst [vmem:[#allocation5] sm:$0x1] %v972_v51 }
 0x334   :  { %1162 = shalt.err (!%p1159_p12)
}
 0x335   :  { %s1163_s21 = scalar_lea.hbm %s1495_s4, 16 }
 0x336   :  { %p1164_p13 = scmp.ne.s32.totalorder %s1495_s4, %s1163_s21  ;;  %p1167_p0 = scmp.lt.u32.totalorder %s1163_s21, %s1495_s4 }
 0x338   :  { %p1169_p1 = pnand %p1167_p0, %p1164_p13 }
 0x33a   :  { %1172 = shalt.err (!%p1169_p1)
}
 0x33b   :  { %984 = dma.vmem_to_hbm [thread:$0]  %s982_s16, 16, %s1495_s4, [#allocation4]  }
 0x33c   :  { %1175 = dma.done.wait [#allocation4], 16  }
 0x33d   :  { %1176 = vsyncadd [#allocation4], 4294967280 }
 0x33e   :  { %988 = vsyncpa [#allocation3], 1 }
 0x33f   :  { %989 = vsyncpa [#allocation4], 1 }

</bundles_post_ra>
